<compile_context>
chip_gen: v6e
topology: v6e:2x2x1
jax: 0.10.0
libtpu: 0.0.40
codegen_flags: <defaults>
</compile_context>

<pallas_src>
import math

import jax
import jax.numpy as jnp
from jax.experimental import pallas as pl
from jax.experimental.pallas import tpu as pltpu

# test=True sigma values from add_noise().
SIG_SHOT = (0.01 - 0.0001) / 2.0   # 0.00495
SIG_READ = (0.03 - 0.001) / 2.0    # 0.0145
_SS2 = SIG_SHOT * SIG_SHOT
_RR2 = SIG_READ * SIG_READ
# TODO(synk): add_noise(test=False) draws sig_shot/sig_read uniformly per call;
# pass them as extra scalar-prefetch operands if the training path is needed.

# Irwin-Hall(4) normalization: z = (b0+b1+b2+b3 - 510) * sqrt(3)/256 ~ N(0, 1).
_IH4_SCALE = math.sqrt(3.0) / 256.0
# Per-channel salts (plain python ints; wrapped to uint32 at trace time).
_CH_SALT = tuple((c * 0x85EBCA6B) & 0xFFFFFFFF for c in range(3))


def _mix32(x):
    """lowbias32 integer hash (good avalanche for sequential counters)."""
    x = x ^ (x >> 16)
    x = x * jnp.uint32(0x7FEB352D)
    x = x ^ (x >> 15)
    x = x * jnp.uint32(0x846CA68B)
    x = x ^ (x >> 16)
    return x


def _full_shutter_kernel(seed_ref, v_ref, o_ref):
    """seed_ref: (1,) i32 SMEM; v_ref: (T, TR, L) f32; o_ref: (3, TR, L) f32."""
    t_frames = v_ref.shape[0]
    tile_r, lanes = o_ref.shape[1], o_ref.shape[2]

    # Per-tile salt hashed from (seed, grid step): 'parallel' scheduling across
    # megacore TCs or tile-size retuning cannot alias noise streams.
    step = pl.program_id(0) * pl.num_programs(1) + pl.program_id(1)
    salt = _mix32(seed_ref[0].astype(jnp.uint32)
                  ^ (step.astype(jnp.uint32) * jnp.uint32(0x9E3779B9)))

    # Per-element counter, hoisted once and reused by all three channels.
    row = jax.lax.broadcasted_iota(jnp.int32, (tile_r, lanes), 0)
    col = jax.lax.broadcasted_iota(jnp.int32, (tile_r, lanes), 1)
    idx = (row * lanes + col).astype(jnp.uint32)

    def gauss(channel):
        # One 32-bit hash per element -> four 8-bit uniforms -> Irwin-Hall(4)
        # approximate N(0,1) (exact mean/var, +-3.46 sigma support: negligible
        # next to the final clamp for sigma <= 0.016).  Pure VPU integer ops:
        # no EUP transcendentals and no TPU-only PRNG primitives.
        h = _mix32(idx + (salt ^ jnp.uint32(_CH_SALT[channel])))
        pair = (h & jnp.uint32(0x00FF00FF)) + ((h >> 8) & jnp.uint32(0x00FF00FF))
        s = (pair & jnp.uint32(0xFFFF)) + (pair >> 16)          # b0+b1+b2+b3
        s = s.astype(jnp.int32).astype(jnp.float32)
        return (s - 510.0) * _IH4_SCALE

    def post_process(meas, channel):
        # (meas/exp_time)*(exp_time/8) == meas/8 for every exposure; the two
        # independent Gaussians (shot, read) are fused into one draw with
        # variance img*sig_shot^2 + sig_read^2 (identical distribution).
        img = meas * 0.125
        sigma = jnp.sqrt(jnp.maximum(img, 0.0) * _SS2 + _RR2)
        return jnp.clip(img + sigma * gauss(channel), 0.0, 1.0)

    # Compute/store so only one measurement plane is live at a time; output
    # channel order matches torch.cat((long, med, short), dim=1).
    short_m = v_ref[0]
    o_ref[2] = post_process(short_m, 2)
    med_m = short_m + v_ref[1] + v_ref[2] + v_ref[3]
    o_ref[1] = post_process(med_m, 1)
    long_m = med_m
    for t in range(4, t_frames):
        long_m = long_m + v_ref[t]
    o_ref[0] = post_process(long_m, 0)


def _choose_lanes(n_padded):
    """Largest lane width in {2048..128} dividing the (128-padded) spatial size
    so every vector store is lane-dense / unmasked."""
    for lane in (2048, 1024, 512, 256, 128):
        if n_padded % lane == 0:
            return lane
    return 128


def _choose_row_tile(rows, lanes, max_elems_per_plane):
    """Row tile: a multiple of 8 (or the full dim) dividing `rows`, keeping the
    double-buffered per-step working set inside the per-generation VMEM budget
    while amortizing the ~0.35us per-grid-step overhead."""
    max_rows = max(1, max_elems_per_plane // lanes)
    if rows <= max_rows:
        return rows
    t = (max_rows // 8) * 8
    while t >= 8:
        if rows % t == 0:
            return t
        t -= 8
    return rows


def _ensure_two_steps(rows, tile_r, batch):
    """v7x megacore: make sure the grid has >= 2 steps so both TCs get work."""
    if batch * (rows // tile_r) >= 2:
        return tile_r
    t = ((rows // 2) // 8) * 8
    while t >= 8:
        if rows % t == 0:
            return t
        t -= 8
    return tile_r


def _budgets_for_device():
    """(max elements per plane-tile, vmem_limit_bytes) per TPU generation."""
    kind = ""
    try:
        kind = jax.devices()[0].device_kind.lower()
    except Exception:
        pass
    if "v5" in kind or "v6" in kind:
        # 128 MiB VMEM parts: bigger tiles / longer DMAs approach HBM roofline.
        return 512 * 1024, 100 * 1024 * 1024
    # v7x-safe default (64 MiB physical VMEM per TC): ~22 MiB double-buffered
    # working set under a 48 MiB scoped limit (headroom for compiler scratch).
    return 256 * 1024, 48 * 1024 * 1024


def full_shutter_forward(video_block, seed=0):
    """video_block: (B, T, H, W) float -> (B, 3, H, W) f32 = (long, med, short)."""
    B, T, H, W = video_block.shape
    assert T >= 4, "Full shutter uses frames [0:1], [0:4], [0:T]."
    v = jnp.asarray(video_block, jnp.float32)
    # TODO(synk): if the producer can emit bf16 video, stream it as bf16 and
    # cast in-kernel to roughly halve read-side HBM traffic on this 8:3 kernel.

    # Lane-dense flattened spatial layout, padded to a multiple of 128 so every
    # store is unmasked (lane-sparse fallback is measured ~4.5x slower).
    n_spatial = H * W
    n_padded = ((n_spatial + 127) // 128) * 128
    lanes = _choose_lanes(n_padded)
    rows = n_padded // lanes

    v = v.reshape(B, T, n_spatial)
    if n_padded != n_spatial:
        v = jnp.pad(v, ((0, 0), (0, 0), (0, n_padded - n_spatial)))
    v = v.reshape(B, T, rows, lanes)

    max_elems, vmem_limit = _budgets_for_device()
    tile_r = _choose_row_tile(rows, lanes, max_elems)
    tile_r = _ensure_two_steps(rows, tile_r, B)

    seed_arr = jnp.asarray([seed], dtype=jnp.int32)

    out = pl.pallas_call(
        _full_shutter_kernel,
        out_shape=jax.ShapeDtypeStruct((B, 3, rows, lanes), jnp.float32),
        grid_spec=pltpu.PrefetchScalarGridSpec(
            num_scalar_prefetch=1,
            grid=(B, rows // tile_r),
            in_specs=[
                pl.BlockSpec((None, T, tile_r, lanes),
                             lambda b, r, seed_ref: (b, 0, r, 0)),
            ],
            out_specs=pl.BlockSpec((None, 3, tile_r, lanes),
                                   lambda b, r, seed_ref: (b, 0, r, 0)),
        ),
        compiler_params=pltpu.CompilerParams(
            dimension_semantics=("parallel", "parallel"),
            vmem_limit_bytes=vmem_limit,
        ),
    )(seed_arr, v)

    out = out.reshape(B, 3, n_padded)
    if n_padded != n_spatial:
        out = out[:, :, :n_spatial]
    return out.reshape(B, 3, H, W)


if __name__ == "__main__":
    # Small deterministic example: batch=2, block_size(frames)=8, spatial=16x16.
    B, T, H, W = 2, 8, 16, 16
    key = jax.random.PRNGKey(0)
    video_block = jax.random.uniform(key, (B, T, H, W), dtype=jnp.float32)

    out = jax.block_until_ready(full_shutter_forward(video_block, seed=0))

    # Validate against the noise-free reference: clamp is 1-Lipschitz and the
    # fused noise std is <= 0.0154 with |z| <= 2*sqrt(3), so |out-clean| < 0.06.
    clean = jnp.concatenate(
        [jnp.clip(jnp.sum(video_block, axis=1, keepdims=True) / 8.0, 0.0, 1.0),
         jnp.clip(jnp.sum(video_block[:, :4], axis=1, keepdims=True) / 8.0, 0.0, 1.0),
         jnp.clip(video_block[:, :1] / 8.0, 0.0, 1.0)],
        axis=1)
    diff = out - clean

    assert out.shape == (B, 3, H, W)
    assert bool(jnp.all(jnp.isfinite(out)))
    assert bool(jnp.all((out >= 0.0) & (out <= 1.0)))
    assert float(jnp.max(jnp.abs(diff))) < 0.06                      # hard noise bound
    assert float(jnp.std(diff)) > 1e-3                               # noise is present
    assert float(jnp.max(jnp.abs(diff[0] - diff[1]))) > 1e-5         # per-tile noise differs
    assert float(jnp.max(jnp.abs(diff[:, 0] - diff[:, 1]))) > 1e-5   # per-channel noise differs
    print("KERNEL_OK")
</pallas_src>

<mosaic_0001>
module attributes {stable_mosaic.version = 11 : i64} {
  func.func @_full_shutter_kernel(%arg0: i32, %arg1: i32, %arg2: memref<1xi32, #tpu.memory_space<smem>>, %arg3: memref<1x8x1x256xf32, #tpu.memory_space<vmem>>, %arg4: memref<1x3x1x256xf32, #tpu.memory_space<vmem>>) attributes {dimension_semantics = [#tpu.dimension_semantics<parallel>, #tpu.dimension_semantics<parallel>], iteration_bounds = array<i64: 2, 1>, scalar_prefetch = 1 : i64, scratch_operands = 0 : i64, tpu.core_type = #tpu.core_type<tc>, window_params = [{transform_indices = @transform_0, window_bounds = array<i64: 1, 8, 1, 256>}, {transform_indices = @transform_1, window_bounds = array<i64: 1, 3, 1, 256>}]} {
    %c1_i32 = arith.constant 1 : i32
    %0 = arith.muli %arg0, %c1_i32 : i32
    %1 = arith.addi %0, %arg1 : i32
    %c0 = arith.constant 0 : index
    %2 = memref.load %arg2[%c0] : memref<1xi32, #tpu.memory_space<smem>>
    %c-1640531527_i32 = arith.constant -1640531527 : i32
    %3 = arith.muli %1, %c-1640531527_i32 : i32
    %4 = arith.xori %2, %3 : i32
    %c16_i32 = arith.constant 16 : i32
    %5 = arith.shrui %4, %c16_i32 : i32
    %6 = arith.xori %4, %5 : i32
    %c2146121005_i32 = arith.constant 2146121005 : i32
    %7 = arith.muli %6, %c2146121005_i32 : i32
    %c15_i32 = arith.constant 15 : i32
    %8 = arith.shrui %7, %c15_i32 : i32
    %9 = arith.xori %7, %8 : i32
    %c-2073254261_i32 = arith.constant -2073254261 : i32
    %10 = arith.muli %9, %c-2073254261_i32 : i32
    %c16_i32_0 = arith.constant 16 : i32
    %11 = arith.shrui %10, %c16_i32_0 : i32
    %12 = arith.xori %10, %11 : i32
    %13 = tpu.iota {dimensions = array<i32: 0>} : vector<1x256xi32>
    %14 = tpu.iota {dimensions = array<i32: 1>} : vector<1x256xi32>
    %c256_i32 = arith.constant 256 : i32
    %15 = vector.broadcast %c256_i32 : i32 to vector<1x256xi32>
    %16 = arith.muli %13, %15 : vector<1x256xi32>
    %17 = arith.addi %16, %14 : vector<1x256xi32>
    %c0_1 = arith.constant 0 : index
    %c0_2 = arith.constant 0 : index
    %c0_3 = arith.constant 0 : index
    %c0_4 = arith.constant 0 : index
    %18 = vector.load %arg3[%c0_1, %c0_2, %c0_3, %c0_4] : memref<1x8x1x256xf32, #tpu.memory_space<vmem>>, vector<1x1x1x256xf32>
    %19 = vector.shape_cast %18 : vector<1x1x1x256xf32> to vector<1x256xf32>
    %cst = arith.constant 1.250000e-01 : f32
    %20 = vector.broadcast %cst : f32 to vector<1x256xf32>
    %21 = arith.mulf %19, %20 : vector<1x256xf32>
    %cst_5 = arith.constant 0.000000e+00 : f32
    %22 = vector.broadcast %cst_5 : f32 to vector<1x256xf32>
    %23 = arith.maximumf %21, %22 : vector<1x256xf32>
    %cst_6 = arith.constant 2.450250e-05 : f32
    %24 = vector.broadcast %cst_6 : f32 to vector<1x256xf32>
    %25 = arith.mulf %23, %24 : vector<1x256xf32>
    %cst_7 = arith.constant 2.102500e-04 : f32
    %26 = vector.broadcast %cst_7 : f32 to vector<1x256xf32>
    %27 = arith.addf %25, %26 : vector<1x256xf32>
    %28 = math.sqrt %27 : vector<1x256xf32>
    %c198677718_i32 = arith.constant 198677718 : i32
    %29 = arith.xori %12, %c198677718_i32 : i32
    %30 = vector.broadcast %29 : i32 to vector<1x256xi32>
    %31 = arith.addi %17, %30 : vector<1x256xi32>
    %c16_i32_8 = arith.constant 16 : i32
    %32 = vector.broadcast %c16_i32_8 : i32 to vector<1x256xi32>
    %33 = arith.shrui %31, %32 : vector<1x256xi32>
    %34 = arith.xori %31, %33 : vector<1x256xi32>
    %c2146121005_i32_9 = arith.constant 2146121005 : i32
    %35 = vector.broadcast %c2146121005_i32_9 : i32 to vector<1x256xi32>
    %36 = arith.muli %34, %35 : vector<1x256xi32>
    %c15_i32_10 = arith.constant 15 : i32
    %37 = vector.broadcast %c15_i32_10 : i32 to vector<1x256xi32>
    %38 = arith.shrui %36, %37 : vector<1x256xi32>
    %39 = arith.xori %36, %38 : vector<1x256xi32>
    %c-2073254261_i32_11 = arith.constant -2073254261 : i32
    %40 = vector.broadcast %c-2073254261_i32_11 : i32 to vector<1x256xi32>
    %41 = arith.muli %39, %40 : vector<1x256xi32>
    %c16_i32_12 = arith.constant 16 : i32
    %42 = vector.broadcast %c16_i32_12 : i32 to vector<1x256xi32>
    %43 = arith.shrui %41, %42 : vector<1x256xi32>
    %44 = arith.xori %41, %43 : vector<1x256xi32>
    %c16711935_i32 = arith.constant 16711935 : i32
    %45 = vector.broadcast %c16711935_i32 : i32 to vector<1x256xi32>
    %46 = arith.andi %44, %45 : vector<1x256xi32>
    %c8_i32 = arith.constant 8 : i32
    %47 = vector.broadcast %c8_i32 : i32 to vector<1x256xi32>
    %48 = arith.shrui %44, %47 : vector<1x256xi32>
    %c16711935_i32_13 = arith.constant 16711935 : i32
    %49 = vector.broadcast %c16711935_i32_13 : i32 to vector<1x256xi32>
    %50 = arith.andi %48, %49 : vector<1x256xi32>
    %51 = arith.addi %46, %50 : vector<1x256xi32>
    %c65535_i32 = arith.constant 65535 : i32
    %52 = vector.broadcast %c65535_i32 : i32 to vector<1x256xi32>
    %53 = arith.andi %51, %52 : vector<1x256xi32>
    %c16_i32_14 = arith.constant 16 : i32
    %54 = vector.broadcast %c16_i32_14 : i32 to vector<1x256xi32>
    %55 = arith.shrui %51, %54 : vector<1x256xi32>
    %56 = arith.addi %53, %55 : vector<1x256xi32>
    %57 = arith.sitofp %56 : vector<1x256xi32> to vector<1x256xf32>
    %cst_15 = arith.constant 5.100000e+02 : f32
    %58 = vector.broadcast %cst_15 : f32 to vector<1x256xf32>
    %59 = arith.subf %57, %58 : vector<1x256xf32>
    %cst_16 = arith.constant 0.00676582335 : f32
    %60 = vector.broadcast %cst_16 : f32 to vector<1x256xf32>
    %61 = arith.mulf %59, %60 : vector<1x256xf32>
    %62 = arith.mulf %28, %61 : vector<1x256xf32>
    %63 = arith.addf %21, %62 : vector<1x256xf32>
    %cst_17 = arith.constant 0.000000e+00 : f32
    %cst_18 = arith.constant 1.000000e+00 : f32
    %64 = vector.broadcast %cst_17 : f32 to vector<1x256xf32>
    %65 = arith.maximumf %64, %63 : vector<1x256xf32>
    %66 = vector.broadcast %cst_18 : f32 to vector<1x256xf32>
    %67 = arith.minimumf %66, %65 : vector<1x256xf32>
    %c0_19 = arith.constant 0 : index
    %c2 = arith.constant 2 : index
    %c0_20 = arith.constant 0 : index
    %c0_21 = arith.constant 0 : index
    %68 = vector.load %arg4[%c0_19, %c2, %c0_20, %c0_21] : memref<1x3x1x256xf32, #tpu.memory_space<vmem>>, vector<1x1x1x256xf32>
    %69 = vector.shape_cast %68 : vector<1x1x1x256xf32> to vector<1x256xf32>
    %70 = vector.shape_cast %67 : vector<1x256xf32> to vector<1x1x1x256xf32>
    tpu.vector_store %arg4[%c0_19, %c2, %c0_20, %c0_21], %70 {strides = array<i32>} : memref<1x3x1x256xf32, #tpu.memory_space<vmem>>, vector<1x1x1x256xf32>,
    %c0_22 = arith.constant 0 : index
    %c1 = arith.constant 1 : index
    %c0_23 = arith.constant 0 : index
    %c0_24 = arith.constant 0 : index
    %71 = vector.load %arg3[%c0_22, %c1, %c0_23, %c0_24] : memref<1x8x1x256xf32, #tpu.memory_space<vmem>>, vector<1x1x1x256xf32>
    %72 = vector.shape_cast %71 : vector<1x1x1x256xf32> to vector<1x256xf32>
    %73 = arith.addf %19, %72 : vector<1x256xf32>
    %c0_25 = arith.constant 0 : index
    %c2_26 = arith.constant 2 : index
    %c0_27 = arith.constant 0 : index
    %c0_28 = arith.constant 0 : index
    %74 = vector.load %arg3[%c0_25, %c2_26, %c0_27, %c0_28] : memref<1x8x1x256xf32, #tpu.memory_space<vmem>>, vector<1x1x1x256xf32>
    %75 = vector.shape_cast %74 : vector<1x1x1x256xf32> to vector<1x256xf32>
    %76 = arith.addf %73, %75 : vector<1x256xf32>
    %c0_29 = arith.constant 0 : index
    %c3 = arith.constant 3 : index
    %c0_30 = arith.constant 0 : index
    %c0_31 = arith.constant 0 : index
    %77 = vector.load %arg3[%c0_29, %c3, %c0_30, %c0_31] : memref<1x8x1x256xf32, #tpu.memory_space<vmem>>, vector<1x1x1x256xf32>
    %78 = vector.shape_cast %77 : vector<1x1x1x256xf32> to vector<1x256xf32>
    %79 = arith.addf %76, %78 : vector<1x256xf32>
    %cst_32 = arith.constant 1.250000e-01 : f32
    %80 = vector.broadcast %cst_32 : f32 to vector<1x256xf32>
    %81 = arith.mulf %79, %80 : vector<1x256xf32>
    %cst_33 = arith.constant 0.000000e+00 : f32
    %82 = vector.broadcast %cst_33 : f32 to vector<1x256xf32>
    %83 = arith.maximumf %81, %82 : vector<1x256xf32>
    %cst_34 = arith.constant 2.450250e-05 : f32
    %84 = vector.broadcast %cst_34 : f32 to vector<1x256xf32>
    %85 = arith.mulf %83, %84 : vector<1x256xf32>
    %cst_35 = arith.constant 2.102500e-04 : f32
    %86 = vector.broadcast %cst_35 : f32 to vector<1x256xf32>
    %87 = arith.addf %85, %86 : vector<1x256xf32>
    %88 = math.sqrt %87 : vector<1x256xf32>
    %c-2048144789_i32 = arith.constant -2048144789 : i32
    %89 = arith.xori %12, %c-2048144789_i32 : i32
    %90 = vector.broadcast %89 : i32 to vector<1x256xi32>
    %91 = arith.addi %17, %90 : vector<1x256xi32>
    %c16_i32_36 = arith.constant 16 : i32
    %92 = vector.broadcast %c16_i32_36 : i32 to vector<1x256xi32>
    %93 = arith.shrui %91, %92 : vector<1x256xi32>
    %94 = arith.xori %91, %93 : vector<1x256xi32>
    %c2146121005_i32_37 = arith.constant 2146121005 : i32
    %95 = vector.broadcast %c2146121005_i32_37 : i32 to vector<1x256xi32>
    %96 = arith.muli %94, %95 : vector<1x256xi32>
    %c15_i32_38 = arith.constant 15 : i32
    %97 = vector.broadcast %c15_i32_38 : i32 to vector<1x256xi32>
    %98 = arith.shrui %96, %97 : vector<1x256xi32>
    %99 = arith.xori %96, %98 : vector<1x256xi32>
    %c-2073254261_i32_39 = arith.constant -2073254261 : i32
    %100 = vector.broadcast %c-2073254261_i32_39 : i32 to vector<1x256xi32>
    %101 = arith.muli %99, %100 : vector<1x256xi32>
    %c16_i32_40 = arith.constant 16 : i32
    %102 = vector.broadcast %c16_i32_40 : i32 to vector<1x256xi32>
    %103 = arith.shrui %101, %102 : vector<1x256xi32>
    %104 = arith.xori %101, %103 : vector<1x256xi32>
    %c16711935_i32_41 = arith.constant 16711935 : i32
    %105 = vector.broadcast %c16711935_i32_41 : i32 to vector<1x256xi32>
    %106 = arith.andi %104, %105 : vector<1x256xi32>
    %c8_i32_42 = arith.constant 8 : i32
    %107 = vector.broadcast %c8_i32_42 : i32 to vector<1x256xi32>
    %108 = arith.shrui %104, %107 : vector<1x256xi32>
    %c16711935_i32_43 = arith.constant 16711935 : i32
    %109 = vector.broadcast %c16711935_i32_43 : i32 to vector<1x256xi32>
    %110 = arith.andi %108, %109 : vector<1x256xi32>
    %111 = arith.addi %106, %110 : vector<1x256xi32>
    %c65535_i32_44 = arith.constant 65535 : i32
    %112 = vector.broadcast %c65535_i32_44 : i32 to vector<1x256xi32>
    %113 = arith.andi %111, %112 : vector<1x256xi32>
    %c16_i32_45 = arith.constant 16 : i32
    %114 = vector.broadcast %c16_i32_45 : i32 to vector<1x256xi32>
    %115 = arith.shrui %111, %114 : vector<1x256xi32>
    %116 = arith.addi %113, %115 : vector<1x256xi32>
    %117 = arith.sitofp %116 : vector<1x256xi32> to vector<1x256xf32>
    %cst_46 = arith.constant 5.100000e+02 : f32
    %118 = vector.broadcast %cst_46 : f32 to vector<1x256xf32>
    %119 = arith.subf %117, %118 : vector<1x256xf32>
    %cst_47 = arith.constant 0.00676582335 : f32
    %120 = vector.broadcast %cst_47 : f32 to vector<1x256xf32>
    %121 = arith.mulf %119, %120 : vector<1x256xf32>
    %122 = arith.mulf %88, %121 : vector<1x256xf32>
    %123 = arith.addf %81, %122 : vector<1x256xf32>
    %cst_48 = arith.constant 0.000000e+00 : f32
    %cst_49 = arith.constant 1.000000e+00 : f32
    %124 = vector.broadcast %cst_48 : f32 to vector<1x256xf32>
    %125 = arith.maximumf %124, %123 : vector<1x256xf32>
    %126 = vector.broadcast %cst_49 : f32 to vector<1x256xf32>
    %127 = arith.minimumf %126, %125 : vector<1x256xf32>
    %c0_50 = arith.constant 0 : index
    %c1_51 = arith.constant 1 : index
    %c0_52 = arith.constant 0 : index
    %c0_53 = arith.constant 0 : index
    %128 = vector.load %arg4[%c0_50, %c1_51, %c0_52, %c0_53] : memref<1x3x1x256xf32, #tpu.memory_space<vmem>>, vector<1x1x1x256xf32>
    %129 = vector.shape_cast %128 : vector<1x1x1x256xf32> to vector<1x256xf32>
    %130 = vector.shape_cast %127 : vector<1x256xf32> to vector<1x1x1x256xf32>
    tpu.vector_store %arg4[%c0_50, %c1_51, %c0_52, %c0_53], %130 {strides = array<i32>} : memref<1x3x1x256xf32, #tpu.memory_space<vmem>>, vector<1x1x1x256xf32>,
    %c0_54 = arith.constant 0 : index
    %c4 = arith.constant 4 : index
    %c0_55 = arith.constant 0 : index
    %c0_56 = arith.constant 0 : index
    %131 = vector.load %arg3[%c0_54, %c4, %c0_55, %c0_56] : memref<1x8x1x256xf32, #tpu.memory_space<vmem>>, vector<1x1x1x256xf32>
    %132 = vector.shape_cast %131 : vector<1x1x1x256xf32> to vector<1x256xf32>
    %133 = arith.addf %79, %132 : vector<1x256xf32>
    %c0_57 = arith.constant 0 : index
    %c5 = arith.constant 5 : index
    %c0_58 = arith.constant 0 : index
    %c0_59 = arith.constant 0 : index
    %134 = vector.load %arg3[%c0_57, %c5, %c0_58, %c0_59] : memref<1x8x1x256xf32, #tpu.memory_space<vmem>>, vector<1x1x1x256xf32>
    %135 = vector.shape_cast %134 : vector<1x1x1x256xf32> to vector<1x256xf32>
    %136 = arith.addf %133, %135 : vector<1x256xf32>
    %c0_60 = arith.constant 0 : index
    %c6 = arith.constant 6 : index
    %c0_61 = arith.constant 0 : index
    %c0_62 = arith.constant 0 : index
    %137 = vector.load %arg3[%c0_60, %c6, %c0_61, %c0_62] : memref<1x8x1x256xf32, #tpu.memory_space<vmem>>, vector<1x1x1x256xf32>
    %138 = vector.shape_cast %137 : vector<1x1x1x256xf32> to vector<1x256xf32>
    %139 = arith.addf %136, %138 : vector<1x256xf32>
    %c0_63 = arith.constant 0 : index
    %c7 = arith.constant 7 : index
    %c0_64 = arith.constant 0 : index
    %c0_65 = arith.constant 0 : index
    %140 = vector.load %arg3[%c0_63, %c7, %c0_64, %c0_65] : memref<1x8x1x256xf32, #tpu.memory_space<vmem>>, vector<1x1x1x256xf32>
    %141 = vector.shape_cast %140 : vector<1x1x1x256xf32> to vector<1x256xf32>
    %142 = arith.addf %139, %141 : vector<1x256xf32>
    %cst_66 = arith.constant 1.250000e-01 : f32
    %143 = vector.broadcast %cst_66 : f32 to vector<1x256xf32>
    %144 = arith.mulf %142, %143 : vector<1x256xf32>
    %cst_67 = arith.constant 0.000000e+00 : f32
    %145 = vector.broadcast %cst_67 : f32 to vector<1x256xf32>
    %146 = arith.maximumf %144, %145 : vector<1x256xf32>
    %cst_68 = arith.constant 2.450250e-05 : f32
    %147 = vector.broadcast %cst_68 : f32 to vector<1x256xf32>
    %148 = arith.mulf %146, %147 : vector<1x256xf32>
    %cst_69 = arith.constant 2.102500e-04 : f32
    %149 = vector.broadcast %cst_69 : f32 to vector<1x256xf32>
    %150 = arith.addf %148, %149 : vector<1x256xf32>
    %151 = math.sqrt %150 : vector<1x256xf32>
    %c0_i32 = arith.constant 0 : i32
    %152 = arith.xori %12, %c0_i32 : i32
    %153 = vector.broadcast %152 : i32 to vector<1x256xi32>
    %154 = arith.addi %17, %153 : vector<1x256xi32>
    %c16_i32_70 = arith.constant 16 : i32
    %155 = vector.broadcast %c16_i32_70 : i32 to vector<1x256xi32>
    %156 = arith.shrui %154, %155 : vector<1x256xi32>
    %157 = arith.xori %154, %156 : vector<1x256xi32>
    %c2146121005_i32_71 = arith.constant 2146121005 : i32
    %158 = vector.broadcast %c2146121005_i32_71 : i32 to vector<1x256xi32>
    %159 = arith.muli %157, %158 : vector<1x256xi32>
    %c15_i32_72 = arith.constant 15 : i32
    %160 = vector.broadcast %c15_i32_72 : i32 to vector<1x256xi32>
    %161 = arith.shrui %159, %160 : vector<1x256xi32>
    %162 = arith.xori %159, %161 : vector<1x256xi32>
    %c-2073254261_i32_73 = arith.constant -2073254261 : i32
    %163 = vector.broadcast %c-2073254261_i32_73 : i32 to vector<1x256xi32>
    %164 = arith.muli %162, %163 : vector<1x256xi32>
    %c16_i32_74 = arith.constant 16 : i32
    %165 = vector.broadcast %c16_i32_74 : i32 to vector<1x256xi32>
    %166 = arith.shrui %164, %165 : vector<1x256xi32>
    %167 = arith.xori %164, %166 : vector<1x256xi32>
    %c16711935_i32_75 = arith.constant 16711935 : i32
    %168 = vector.broadcast %c16711935_i32_75 : i32 to vector<1x256xi32>
    %169 = arith.andi %167, %168 : vector<1x256xi32>
    %c8_i32_76 = arith.constant 8 : i32
    %170 = vector.broadcast %c8_i32_76 : i32 to vector<1x256xi32>
    %171 = arith.shrui %167, %170 : vector<1x256xi32>
    %c16711935_i32_77 = arith.constant 16711935 : i32
    %172 = vector.broadcast %c16711935_i32_77 : i32 to vector<1x256xi32>
    %173 = arith.andi %171, %172 : vector<1x256xi32>
    %174 = arith.addi %169, %173 : vector<1x256xi32>
    %c65535_i32_78 = arith.constant 65535 : i32
    %175 = vector.broadcast %c65535_i32_78 : i32 to vector<1x256xi32>
    %176 = arith.andi %174, %175 : vector<1x256xi32>
    %c16_i32_79 = arith.constant 16 : i32
    %177 = vector.broadcast %c16_i32_79 : i32 to vector<1x256xi32>
    %178 = arith.shrui %174, %177 : vector<1x256xi32>
    %179 = arith.addi %176, %178 : vector<1x256xi32>
    %180 = arith.sitofp %179 : vector<1x256xi32> to vector<1x256xf32>
    %cst_80 = arith.constant 5.100000e+02 : f32
    %181 = vector.broadcast %cst_80 : f32 to vector<1x256xf32>
    %182 = arith.subf %180, %181 : vector<1x256xf32>
    %cst_81 = arith.constant 0.00676582335 : f32
    %183 = vector.broadcast %cst_81 : f32 to vector<1x256xf32>
    %184 = arith.mulf %182, %183 : vector<1x256xf32>
    %185 = arith.mulf %151, %184 : vector<1x256xf32>
    %186 = arith.addf %144, %185 : vector<1x256xf32>
    %cst_82 = arith.constant 0.000000e+00 : f32
    %cst_83 = arith.constant 1.000000e+00 : f32
    %187 = vector.broadcast %cst_82 : f32 to vector<1x256xf32>
    %188 = arith.maximumf %187, %186 : vector<1x256xf32>
    %189 = vector.broadcast %cst_83 : f32 to vector<1x256xf32>
    %190 = arith.minimumf %189, %188 : vector<1x256xf32>
    %c0_84 = arith.constant 0 : index
    %c0_85 = arith.constant 0 : index
    %c0_86 = arith.constant 0 : index
    %c0_87 = arith.constant 0 : index
    %191 = vector.load %arg4[%c0_84, %c0_85, %c0_86, %c0_87] : memref<1x3x1x256xf32, #tpu.memory_space<vmem>>, vector<1x1x1x256xf32>
    %192 = vector.shape_cast %191 : vector<1x1x1x256xf32> to vector<1x256xf32>
    %193 = vector.shape_cast %190 : vector<1x256xf32> to vector<1x1x1x256xf32>
    tpu.vector_store %arg4[%c0_84, %c0_85, %c0_86, %c0_87], %193 {strides = array<i32>} : memref<1x3x1x256xf32, #tpu.memory_space<vmem>>, vector<1x1x1x256xf32>,
    return
  }
  func.func @transform_0(%arg0: i32, %arg1: i32, %arg2: memref<1xi32, #tpu.memory_space<smem>>) -> (i32, i32, i32, i32) {
    %c0_i32 = arith.constant 0 : i32
    %c0_i32_0 = arith.constant 0 : i32
    %c0_i32_1 = arith.constant 0 : i32
    return %arg0, %c0_i32, %arg1, %c0_i32_0 : i32, i32, i32, i32
  }
  func.func @transform_1(%arg0: i32, %arg1: i32, %arg2: memref<1xi32, #tpu.memory_space<smem>>) -> (i32, i32, i32, i32) {
    %c0_i32 = arith.constant 0 : i32
    %c0_i32_0 = arith.constant 0 : i32
    %c0_i32_1 = arith.constant 0 : i32
    return %arg0, %c0_i32, %arg1, %c0_i32_0 : i32, i32, i32, i32
  }
}

</mosaic_0001>

<bundles_post_ra>
// kernel: tpu_custom_call.1
= control target key start
LH: loop header
LB: loop body
LE: loop exit
PB: predicated region body
PF: predicated region fallthrough
CT: control target
= control target key end

     0   :  { %s990_s0 = inlined_call_operand.<no memory space> [shape: s32[1], index: 0, kind: input, shape index: {}]   ;;  %s991_s1 = inlined_call_operand.hbm [shape: f32[2,8,1,256], index: 1, kind: input, shape index: {}]   ;;  %s992_s2 = inlined_call_operand.hbm [shape: f32[2,3,1,256], index: 2, kind: output, shape index: {}]  }
   0x1   :  { %7 = sst [smem:[#allocation3]] %s990_s0 }
   0x2   :  { %8 = vsyncpa [#allocation5], 0 }
   0x3   :  { %10 = vsyncpa [#allocation5 + $0x1], 0 }
   0x4   :  { %11 = vsyncpa [#allocation6], 0 }
   0x5   :  { %13 = vsyncpa [#allocation6 + $0x1], 0  ;;  %s765_s11 = smov 0   ;;  %s767_s12 = smov 0  }
   0x6   :  { %s769_s13 = smov 0   ;;  %s771_s14 = smov 0  }
   0x7   :  { %s773_s15 = smov 0   ;;  %s775_s16 = smov 0  }
   0x8 LB: > { %s527_s0 = sadd.s32 4294967295, %s738_s16   ;;  %s528_s17 = sadd.s32 4294967294, %s738_s16   ;;  %s738_s16 = sphi %s775_s16, %s19_s16   ;;  %s734_s15 = sphi %s773_s15, %s1005_s15   ;;  %s730_s14 = sphi %s771_s14, %s1004_s14   ;;  %s726_s13 = sphi %s769_s13, %s1003_s13   ;;  %s722_s12 = sphi %s767_s12, %s1002_s12   ;;  %s718_s11 = sphi %s765_s11, %s1001_s11  }
   0x9   : > { %s31_s18 = sadd.s32 1, %s734_s15  ;;  %s40_s19 = sadd.s32 1, %s726_s13 }
   0xa   : > { %p33_p0 = scmp.ge.s32.totalorder %s31_s18, 2  ;;  %p47_p1 = scmp.ne.s32.totalorder %s726_s13, %s722_s12 }
   0xb   : > { %p48_p2 = scmp.eq.s32.totalorder %s738_s16, 0  ;;  %p53_p3 = scmp.ne.s32.totalorder %s722_s12, %s718_s11 }
   0xc   : > { %s1007_s18 = smov (%p33_p0, %s31_s18), 0  ;;  %p54_p5 = scmp.eq.s32.totalorder %s527_s0, 0 }
   0xd   : > { %p806_p4 = por %p48_p2, %p47_p1  ;;  %s35_s21 = ssub.s32 %s734_s15, %s1007_s18 }
   0xe   : > { %p79_p6 = scmp.eq.s32.totalorder %s527_s0, 1  ;;  %p38_p7 = scmp.eq.s32.totalorder %s35_s21, 0 }
   0xf   : > { %p812_p8 = por %p54_p5, %p53_p3  ;;  %p85_p10 = scmp.eq.s32.totalorder %s528_s17, 1 }
  0x10   : > { %p816_p9 = por %p79_p6, %p47_p1  ;;  %p569_p13 = scmp.lt.s32.totalorder %s738_s16, 2 }
  0x11   : > { %s821_s24 = scalar_select %p38_p7, %s726_s13, %s40_s19  }
  0x12   : > { %p823_p11 = por %p85_p10, %p53_p3  ;;  %s105_s26 = sand.u32 1, %s726_s13  }
  0x13   : > { %s531_s27 = sshll.u32 %s105_s26, 4  ;;  %s554_s28 = sshll.u32 %s734_s15, 8 }
  0x14   : > { %s117_s3 = scalar_lea.hbm %s991_s1, %s554_s28  ;;  %s109_s4 = scalar_lea.vmem [#allocation4], %s531_s27 }
  0x15   : > { %s118_s5 = sshll.u32 %s109_s4, 4  ;;  %p836_p0 = pnand %p569_p13, %p806_p4  ;;  %s119_s5 = int_to_ptr.vmem [resolvable:$true] %s118_s5 }
  0x16   : > { %p534_p1 = scmp.ge.s32.totalorder %s738_s16, 1  ;;  %s106_s7 = scalar_lea.sflag [#allocation5], %s105_s26 }
  0x17   : > { %p632_p2 = pneg %p836_p0  ;;  %s643_s8 = scalar_lea.vmem %s119_s5, 256 }
  0x18   : > { %p644_p3 = scmp.ne.s32.totalorder %s119_s5, %s643_s8  ;;  %s740_s9 = smov [#allocation4]  }
  0x19   : > { %s648_s10 = sshll.u32 %s740_s9, 4  ;;  %s649_s10 = int_to_ptr.vmem [resolvable:$false] %s648_s10 }
  0x1a   : > { %p646_p5 = pnand %p644_p3, %p632_p2  ;;  %s650_s0 = scalar_lea.vmem %s649_s10, 512 }
  0x1b   : > { %p651_p7 = scmp.lt.s32.totalorder %s119_s5, %s649_s10  ;;  %p652_p10 = scmp.lt.s32.totalorder %s650_s0, %s643_s8 }
  0x1c   : > { %p647_p6 = pneg %p646_p5 }
  0x1d   : > { %p653_p12 = por %p652_p10, %p651_p7 }
  0x1f   : > { %p654_p4 = pnand %p653_p12, %p647_p6 }
  0x21   : > { %657 = shalt.err (!%p654_p4)
}
  0x22   : > { %s741_s17 = smov 32   ;;  %s742_s19 = smov 2  }
  0x23   : > { %564 = dma.hbm_to_vmem [thread:$0]  (!%p836_p0), %s117_s3, 256, %s119_s5, %s106_s7, %s741_s17, %s741_s17, %s742_s19  }
  0x24   : > { %p126_p13 = scmp.lt.s32.totalorder %s738_s16, 3 }
  0x26   : > { %p127_p2 = pnand %p534_p1, %p126_p13 }
  0x27   : > { %s849_s20 = sand.u32 (!%p127_p2), 1, %s722_s12  }
  0x28   : > { %130 = sbr.rel (%p127_p2) target bundleno = 132 (0x84), region = 24  ;;  %s535_s21 = sshll.u32 (!%p127_p2), %s849_s20, 4 }
  0x29   : > { %s133_s26 = scalar_lea.sflag (!%p127_p2), [#allocation5], %s849_s20  ;;  %s853_s27 = scalar_lea.vmem (!%p127_p2), [#allocation4], %s535_s21 }
  0x2d   : > { %709 = dma.done.wait (%p812_p8), %s133_s26, 256  }
  0x2e   : > { %711 = vsyncadd (%p812_p8), %s133_s26, 4294967040  ;;  %s156_s28 = sld [smem:[#allocation3]]  ;;  %v167_v0 = vlaneseq  ;;  %s157_s29 = smul.u32 2654435769, %s730_s14  ;;  %v175_v3 = vld [vmem:[%s853_s27] sm:$0x3] }
  0x2f   : > { %v539_v4 = vld [vmem:[%s853_s27 + $0x2] sm:$0x3]  ;;  %v540_v5 = vld [vmem:[%s853_s27 + $0x4] sm:$0x3]  ;;  %v541_v7 = vld [vmem:[%s853_s27 + $0x6] sm:$0x3] }
  0x30   : > { %v861_v1 = vshrl.u32 %v167_v0, 7  ;;  %v170_v2 = vand.u32 127, %v167_v0  ;;  %v257_v6 = vadd.f32 %v539_v4, %v175_v3  ;;  %v545_v11 = vld [vmem:[%s853_s27 + $0x8] sm:$0x3]  ;;  %v870_v13 = vmul.f32 0.125, %v175_v3  ;;  %s555_s17 = smul.u32 6, %s849_s20 }
  0x31   : > { %v546_v15 = vld [vmem:[%s853_s27 + $0xa] sm:$0x3]  ;;  %v547_v20 = vld [vmem:[%s853_s27 + $0xc] sm:$0x3]  ;;  %v548_v31 = vld [vmem:[%s853_s27 + $0xe] sm:$0x3] }
  0x32   : > { %v260_v8 = vadd.f32 %v540_v5, %v257_v6  ;;  %v171_v9 = vadd.s32 128, %v170_v2  ;;  %v172_v10 = vmul.u32 256, %v861_v1  ;;  %v177_v21 = vmax.f32 %v870_v13, 0.0  ;;  %s154_s19 = scalar_lea.vmem [#allocation7], %s555_s17  ;;  %s556_s26 = smul.u32 96, %s730_s14 }
  0x33   : > { %vm924_vm6 = vcmp.lt.s32.totalorder %v167_v0, 256  ;;  %s440_s21 = sshll.u32 %s154_s19, 4  ;;  %s425_s14 = scalar_lea.sflag [#allocation6], %s849_s20  ;;  %s933_s21 = int_to_ptr.vmem [resolvable:$true] %s440_s21 }
  0x34   : > { %s158_s30 = sxor.u32 %s157_s29, %s156_s28  ;;  %v263_v12 = vadd.f32 %v541_v7, %v260_v8  ;;  %v173_v16 = vadd.s32 %v172_v10, %v170_v2  ;;  %v174_v17 = vadd.s32 %v172_v10, %v171_v9  ;;  %v178_v40 = vmul.f32 2.45025e-05, %v177_v21  ;;  %s940_s29 = scalar_lea.hbm %s992_s2, %s556_s26 }
  0x35   : > { %s159_s22 = sshrl.u32 %s158_s30, 16 }
  0x36   : > { %s160_s3 = sxor.u32 %s159_s22, %s158_s30  ;;  %v341_v14 = vadd.f32 %v545_v11, %v263_v12  ;;  %v873_v18 = vmul.f32 0.125, %v263_v12  ;;  %v879_v57 = vadd.f32 0.00021025, %v178_v40  ;;  %s658_s30 = scalar_lea.vmem %s933_s21, 96 }
  0x37   : > { %s161_s4 = smul.u32 2146121005, %s160_s3  ;;  %p659_p8 = scmp.ne.s32.totalorder %s933_s21, %s658_s30 }
  0x38   : > { %v344_v19 = vadd.f32 %v546_v15, %v341_v14  ;;  %v265_v34 = vmax.f32 %v873_v18, 0.0  ;;  %v743_v14 = vmov 1966171168   ;;  %624 = vrsqrt.f32 %v879_v57  ;;  %s744_s22 = smov [#allocation7]  }
  0x39   : > { %s162_s5 = sshrl.u32 %s161_s4, 15  ;;  %v231_v15 = vunpack.c.l.s4 %v743_v14  ;;  %vm182_vm0 = vcmp.eq.f32.partialorder %v879_v57, inf  ;;  %vm184_vm1 = vcmp.eq.f32.partialorder %v879_v57, 0.0  ;;  %p660_p12 = pnand %p659_p8, %p816_p9 }
  0x3a   : > { %s163_s6 = sxor.u32 %s162_s5, %s161_s4  ;;  %v347_v35 = vadd.f32 %v547_v20, %v344_v19  ;;  %v266_v52 = vmul.f32 2.45025e-05, %v265_v34  ;;  %s662_s3 = sshll.u32 %s744_s22, 4  ;;  %s663_s3 = int_to_ptr.vmem [resolvable:$false] %s662_s3 }
  0x3b   : > { %s164_s7 = smul.u32 2221713035, %s163_s6  ;;  %p661_p0 = pneg %p660_p12 }
  0x3c   : > { %v350_v43 = vadd.f32 %v548_v31, %v347_v35  ;;  %v883_v5 = vadd.f32 0.00021025, %v266_v52  ;;  %s664_s4 = scalar_lea.vmem %s663_s3, 192  ;;  %p665_p1 = scmp.lt.s32.totalorder %s933_s21, %s663_s3 }
  0x3d   : > { %s165_s8 = sshrl.u32 %s164_s7, 16  ;;  %p666_p3 = scmp.lt.s32.totalorder %s664_s4, %s658_s30 }
  0x3e   : > { %s166_s9 = sxor.u32 %s165_s8, %s164_s7  ;;  %v881_v60 = vmul.f32 0.125, %v350_v43  ;;  %626 = vrsqrt.f32 %v883_v5  ;;  %vm270_vm2 = vcmp.eq.f32.partialorder %v883_v5, inf  ;;  %vm272_vm3 = vcmp.eq.f32.partialorder %v883_v5, 0.0 }
  0x3f   : > { %s187_s10 = sxor.u32 198677718, %s166_s9  ;;  %s275_s0 = sxor.u32 2246822507, %s166_s9  ;;  %v362_v22 = vstv %s166_s9 }
  0x40   : > { %v188_v23 = vstv %s187_s10  ;;  %v276_v24 = vstv %s275_s0  ;;  %v363_v25 = vadd.s32 %v362_v22, %v173_v16  ;;  %v364_v26 = vadd.s32 %v362_v22, %v174_v17  ;;  %p667_p5 = por %p666_p3, %p665_p1 }
  0x41   : > { %v189_v27 = vadd.s32 %v188_v23, %v173_v16  ;;  %v190_v28 = vadd.s32 %v188_v23, %v174_v17  ;;  %v277_v29 = vadd.s32 %v276_v24, %v173_v16  ;;  %v278_v30 = vadd.s32 %v276_v24, %v174_v17 }
  0x42   : > { %v365_v32 = vshrl.u32 %v363_v25, 16  ;;  %v366_v33 = vshrl.u32 %v364_v26, 16  ;;  %v352_v6 = vmax.f32 %v881_v60, 0.0  ;;  %p668_p6 = pnand %p667_p5, %p661_p0 }
  0x43   : > { %v191_v36 = vshrl.u32 %v189_v27, 16  ;;  %v192_v37 = vshrl.u32 %v190_v28, 16  ;;  %v279_v38 = vshrl.u32 %v277_v29, 16  ;;  %v280_v39 = vshrl.u32 %v278_v30, 16 }
  0x44   : > { %v367_v41 = vxor.u32 %v365_v32, %v363_v25  ;;  %v368_v42 = vxor.u32 %v366_v33, %v364_v26  ;;  %v353_v16 = vmul.f32 2.45025e-05, %v352_v6 }
  0x45   : > { %v193_v44 = vxor.u32 %v191_v36, %v189_v27  ;;  %v194_v45 = vxor.u32 %v192_v37, %v190_v28  ;;  %v281_v46 = vxor.u32 %v279_v38, %v277_v29  ;;  %v282_v47 = vxor.u32 %v280_v39, %v278_v30  ;;  %v625_v6 = vpop.eup %624 }
  0x46   : > { %v369_v48 = vmul.u32 2146121005, %v367_v41  ;;  %v370_v49 = vmul.u32 2146121005, %v368_v42  ;;  %v887_v25 = vadd.f32 0.00021025, %v353_v16  ;;  %v232_v28 = vunpack.c.0.s8 %v231_v15 }
  0x47   : > { %v195_v50 = vmul.u32 2146121005, %v193_v44  ;;  %v196_v51 = vmul.u32 2146121005, %v194_v45 }
  0x48   : > { %v283_v53 = vmul.u32 2146121005, %v281_v46  ;;  %v284_v54 = vmul.u32 2146121005, %v282_v47  ;;  %v371_v55 = vshrl.u32 %v369_v48, 15  ;;  %v372_v56 = vshrl.u32 %v370_v49, 15 }
  0x49   : > { %v197_v58 = vshrl.u32 %v195_v50, 15  ;;  %v198_v59 = vshrl.u32 %v196_v51, 15  ;;  %628 = vrsqrt.f32 %v887_v25  ;;  %v892_v43 = vsub.s32 %v232_v28, %v861_v1 }
  0x4a   : > { %v285_v61 = vshrl.u32 %v283_v53, 15  ;;  %v286_v62 = vshrl.u32 %v284_v54, 15  ;;  %v373_v63 = vxor.u32 %v371_v55, %v369_v48  ;;  %v374_v2 = vxor.u32 %v372_v56, %v370_v49 }
  0x4b   : > { %v199_v3 = vxor.u32 %v197_v58, %v195_v50  ;;  %v200_v4 = vxor.u32 %v198_v59, %v196_v51  ;;  %vm357_vm4 = vcmp.eq.f32.partialorder %v887_v25, inf  ;;  %vm359_vm5 = vcmp.eq.f32.partialorder %v887_v25, 0.0 }
  0x4c   : > { %v287_v7 = vxor.u32 %v285_v61, %v283_v53  ;;  %v288_v8 = vxor.u32 %v286_v62, %v284_v54  ;;  %v375_v9 = vmul.u32 2221713035, %v373_v63  ;;  %v376_v10 = vmul.u32 2221713035, %v374_v2 }
  0x4d   : > { %v201_v11 = vmul.u32 2221713035, %v199_v3  ;;  %v202_v12 = vmul.u32 2221713035, %v200_v4 }
  0x4e   : > { %v289_v17 = vmul.u32 2221713035, %v287_v7  ;;  %v290_v19 = vmul.u32 2221713035, %v288_v8  ;;  %v377_v20 = vshrl.u32 %v375_v9, 16  ;;  %v378_v29 = vshrl.u32 %v376_v10, 16 }
  0x4f   : > { %v203_v21 = vshrl.u32 %v201_v11, 16  ;;  %v204_v22 = vshrl.u32 %v202_v12, 16 }
  0x50   : > { %v291_v23 = vshrl.u32 %v289_v17, 16  ;;  %v292_v24 = vshrl.u32 %v290_v19, 16  ;;  %v379_v31 = vxor.u32 %v377_v20, %v375_v9  ;;  %v380_v42 = vxor.u32 %v378_v29, %v376_v10 }
  0x51   : > { %v205_v26 = vxor.u32 %v203_v21, %v201_v11  ;;  %v206_v27 = vxor.u32 %v204_v22, %v202_v12  ;;  %v627_v21 = vpop.eup %626  ;;  %v181_v22 = vmul.f32 %v625_v6, %v879_v57 }
  0x52   : > { %v293_v30 = vxor.u32 %v291_v23, %v289_v17  ;;  %v294_v32 = vxor.u32 %v292_v24, %v290_v19  ;;  %v383_v46 = vshrl.u32 %v379_v31, 8  ;;  %v381_v50 = vand.u32 16711935, %v379_v31 }
  0x53   : > { %v207_v33 = vand.u32 16711935, %v205_v26  ;;  %v208_v34 = vand.u32 16711935, %v206_v27  ;;  %v209_v35 = vshrl.u32 %v205_v26, 8  ;;  %v210_v36 = vshrl.u32 %v206_v27, 8 }
  0x54   : > { %v295_v37 = vand.u32 16711935, %v293_v30  ;;  %v297_v38 = vshrl.u32 %v293_v30, 8  ;;  %v298_v41 = vshrl.u32 %v294_v32, 8  ;;  %v296_v44 = vand.u32 16711935, %v294_v32 }
  0x55   : > { %v211_v39 = vand.u32 16711935, %v209_v35  ;;  %v212_v40 = vand.u32 16711935, %v210_v36  ;;  %v382_v52 = vand.u32 16711935, %v380_v42  ;;  %v269_v35 = vmul.f32 %v627_v21, %v883_v5 }
  0x56   : > { %v299_v45 = vand.u32 16711935, %v297_v38  ;;  %v300_v49 = vand.u32 16711935, %v298_v41  ;;  %v384_v53 = vshrl.u32 %v380_v42, 8  ;;  %v629_v30 = vpop.eup %628  ;;  %v185_v31 = vand.u32 2147483648, %v879_v57 }
  0x57   : > { %v213_v47 = vadd.s32 %v211_v39, %v207_v33  ;;  %v214_v48 = vadd.s32 %v212_v40, %v208_v34  ;;  %v385_v54 = vand.u32 16711935, %v383_v46  ;;  %v183_v39 = vsel %vm182_vm0, %v879_v57, %v181_v22 }
  0x58   : > { %v301_v51 = vadd.s32 %v299_v45, %v295_v37  ;;  %v302_v61 = vadd.s32 %v300_v49, %v296_v44  ;;  %v386_v1 = vand.u32 16711935, %v384_v53  ;;  %v356_v44 = vmul.f32 %v629_v30, %v887_v25 }
  0x59   : > { %v215_v55 = vand.u32 65535, %v213_v47  ;;  %v216_v56 = vand.u32 65535, %v214_v48  ;;  %v217_v58 = vshrl.u32 %v213_v47, 16  ;;  %v218_v59 = vshrl.u32 %v214_v48, 16 }
  0x5a   : > { %v303_v62 = vand.u32 65535, %v301_v51  ;;  %v305_v63 = vshrl.u32 %v301_v51, 16  ;;  %v387_v4 = vadd.s32 %v385_v54, %v381_v50  ;;  %v304_v7 = vand.u32 65535, %v302_v61 }
  0x5b   : > { %v219_v2 = vadd.s32 %v217_v58, %v215_v55  ;;  %v220_v3 = vadd.s32 %v218_v59, %v216_v56  ;;  %v306_v8 = vshrl.u32 %v302_v61, 16  ;;  %v388_v10 = vadd.s32 %v386_v1, %v382_v52 }
  0x5c   : > { %v307_v9 = vadd.s32 %v305_v63, %v303_v62  ;;  %v389_v14 = vand.u32 65535, %v387_v4  ;;  %v391_v15 = vshrl.u32 %v387_v4, 16  ;;  %v273_v47 = vand.u32 2147483648, %v883_v5 }
  0x5d   : > { %v221_v11 = vcvt.s32.f32 %v219_v2  ;;  %v222_v12 = vcvt.s32.f32 %v220_v3  ;;  %v308_v16 = vadd.s32 %v306_v8, %v304_v7  ;;  %v390_v19 = vand.u32 65535, %v388_v10 }
  0x5e   : > { %v309_v17 = vcvt.s32.f32 %v307_v9  ;;  %v392_v20 = vshrl.u32 %v388_v10, 16  ;;  %v393_v26 = vadd.s32 %v391_v15, %v389_v14  ;;  %v186_v49 = vsel %vm184_vm1, %v185_v31, %v183_v39 }
  0x5f   : > { %v536_v23 = vadd.f32 -510.0, %v221_v11  ;;  %v537_v24 = vadd.f32 -510.0, %v222_v12  ;;  %v310_v27 = vcvt.s32.f32 %v308_v16  ;;  %v271_v50 = vsel %vm270_vm2, %v883_v5, %v269_v35 }
  0x60   : > { %v542_v28 = vadd.f32 -510.0, %v309_v17  ;;  %v394_v29 = vadd.s32 %v392_v20, %v390_v19  ;;  %v395_v34 = vcvt.s32.f32 %v393_v26  ;;  %v360_v54 = vand.u32 2147483648, %v887_v25 }
  0x61   : > { %v225_v32 = vmul.f32 0.0067658233, %v536_v23  ;;  %v226_v33 = vmul.f32 0.0067658233, %v537_v24  ;;  %v543_v36 = vadd.f32 -510.0, %v310_v27  ;;  %v358_v56 = vsel %vm357_vm4, %v887_v25, %v356_v44 }
  0x62   : > { %v313_v37 = vmul.f32 0.0067658233, %v542_v28  ;;  %v396_v38 = vcvt.s32.f32 %v394_v29  ;;  %v549_v41 = vadd.f32 -510.0, %v395_v34  ;;  %v274_v57 = vsel %vm272_vm3, %v273_v47, %v271_v50 }
  0x63   : > { %v229_v40 = vcombine.low %v225_v32, %v226_v33  ;;  %v314_v42 = vmul.f32 0.0067658233, %v543_v36  ;;  %v361_v1 = vsel %vm359_vm5, %v360_v54, %v358_v56 }
  0x64   : > { %v550_v45 = vadd.f32 -510.0, %v396_v38  ;;  %v399_v48 = vmul.f32 0.0067658233, %v549_v41 }
  0x65   : > { %v236_v46 = vrot.slane %v229_v40, %v892_v43  ;;  %v317_v51 = vcombine.low %v313_v37, %v314_v42 }
  0x66   : > { %v400_v52 = vmul.f32 0.0067658233, %v550_v45 }
  0x67   : > { %v243_v53 = vrot.slane %v236_v46, %v892_v43  ;;  %v324_v55 = vrot.slane %v317_v51, %v892_v43 }
  0x68   : > { %v403_v58 = vcombine.low %v399_v48, %v400_v52 }
  0x69   : > { %v245_v59 = vmul.f32 %v243_v53, %v186_v49  ;;  %v331_v61 = vrot.slane %v324_v55, %v892_v43 }
  0x6a   : > { %v410_v62 = vrot.slane %v403_v58, %v892_v43 }
  0x6b   : > { %v246_v63 = vadd.f32 %v245_v59, %v870_v13  ;;  %v333_v2 = vmul.f32 %v331_v61, %v274_v57 }
  0x6c   : > { %v417_v3 = vrot.slane %v410_v62, %v892_v43 }
  0x6d   : > { %v247_v4 = vmax.f32 %v246_v63, 0.0  ;;  %v334_v5 = vadd.f32 %v333_v2, %v873_v18 }
  0x6e   : > { %v419_v6 = vmul.f32 %v417_v3, %v361_v1 }
  0x6f   : > { %v248_v7 = vmin.f32 %v247_v4, 1.0  ;;  %v335_v8 = vmax.f32 %v334_v5, 0.0 }
  0x70   : > { %v420_v13 = vadd.f32 %v419_v6, %v881_v60 }
  0x71   : > { %538 = vst.msk [vmem:[%s154_s19 + $0x4] sm:$0x3] %vm924_vm6, %v248_v7  ;;  %v336_v43 = vmin.f32 %v335_v8, 1.0 }
  0x72   : > { %v421_v0 = vmax.f32 %v420_v13, 0.0 }
  0x73   : > { %544 = vst.msk [vmem:[%s154_s19 + $0x2] sm:$0x3] %vm924_vm6, %v336_v43 }
  0x74   : > { %v422_v18 = vmin.f32 %v421_v0, 1.0 }
  0x76   : > { %423 = vst.msk [vmem:[%s154_s19] sm:$0x3] %vm924_vm6, %v422_v18 }
  0x77   : > { %671 = shalt.err (!%p668_p6)
}
  0x78   : > { %s672_s5 = scalar_lea.hbm %s940_s29, 96  ;;  %s676_s8 = scalar_lea.hbm %s992_s2, 192 }
  0x79   : > { %p673_p7 = scmp.ne.s32.totalorder %s940_s29, %s672_s5  ;;  %p677_p13 = scmp.lt.s32.totalorder %s940_s29, %s992_s2 }
  0x7a   : > { %p678_p2 = scmp.lt.s32.totalorder %s676_s8, %s672_s5 }
  0x7b   : > { %p674_p10 = pnand %p673_p7, %p816_p9 }
  0x7c   : > { %p679_p8 = por %p678_p2, %p677_p13 }
  0x7d   : > { %p675_p4 = pneg %p674_p10 }
  0x7f   : > { %p680_p12 = pnand %p679_p8, %p675_p4 }
  0x81   : > { %683 = shalt.err (!%p680_p12)
}
  0x82   : > { %s745_s0 = smov 32   ;;  %s746_s17 = smov 2  }
  0x83   : > { %559 = dma.vmem_to_hbm [thread:$0]  (%p816_p9), %s933_s21, 96, %s940_s29, %s425_s14, %s745_s0, %s745_s0, %s746_s17  }
  0x84 PF: > { %s455_s19 = sand.u32 1, %s718_s11   ;;  %p1000_p0 = scmp.ge.s32.totalorder %s738_s16, 2 }
  0x85   : > { %s456_s26 = scalar_lea.sflag [#allocation6], %s455_s19 }
  0x86   : > { %p566_p1 = pnand %p1000_p0, %p823_p11 }
  0x88   : > { %p567_p3 = pneg %p566_p1 }
  0x8a   : > { %713 = dma.done.wait (%p567_p3), %s456_s26, 96  }
  0x8b   : > { %715 = vsyncadd (%p567_p3), %s456_s26, 4294967200  ;;  %s19_s16 = sadd.s32 1, %s738_s16   ;;  %s1001_s11 = smov %s722_s12 }
  0x8c   : > { %p16_p5 = scmp.ge.s32.totalorder %s19_s16, 4   ;;  %s1002_s12 = smov %s726_s13 }
  0x8d   : > { %s1003_s13 = smov %s821_s24  ;;  %s1004_s14 = smov %s734_s15 }
  0x8e   : > { %s1005_s15 = smov %s1007_s18  ;;  %18 = sbr.rel (!%p16_p5) target bundleno = 8 (0x8), region = 78 }
  0x93   :  { %461 = vsyncpa [#allocation5], 1 }
  0x94   :  { %463 = vsyncpa [#allocation5 + $0x1], 1 }
  0x95   :  { %464 = vsyncpa [#allocation6], 1 }
  0x96   :  { %466 = vsyncpa [#allocation6 + $0x1], 1 }

</bundles_post_ra>
